<compile_context>
chip_gen: v7x
topology: tpu7x:2x2x1
jax: 0.10.0
libtpu: 0.0.40
codegen_flags: <defaults>
</compile_context>

<pallas_src>
import functools

import jax
import jax.numpy as jnp
from jax.experimental import pallas as pl
from jax.experimental.pallas import tpu as pltpu


def _erf_approx(v):
    # Abramowitz & Stegun 7.1.26 rational approximation of erf, |error| <= 1.5e-7.
    # Uses only ops with guaranteed Mosaic lowerings (mul/add/div/exp/abs/where).
    a1, a2, a3, a4, a5 = (0.254829592, -0.284496736, 1.421413741,
                          -1.453152027, 1.061405429)
    p = 0.3275911
    x = jnp.abs(v)
    t = 1.0 / (1.0 + p * x)
    poly = ((((a5 * t + a4) * t + a3) * t + a2) * t + a1) * t
    pos = 1.0 - poly * jnp.exp(-x * x)
    return jnp.where(v >= 0.0, pos, -pos)


def _gelu_exact(v):
    # nn.GELU() default (approximate='none'): 0.5*x*(1+erf(x/sqrt(2)))
    return 0.5 * v * (1.0 + _erf_approx(v * 0.7071067811865476))


# ---------------------------------------------------------------------------
# Pass 1: conv (single im2col matmul per row) + bias, emit y and [sum, sumsq].
# ---------------------------------------------------------------------------
def _conv_stats_kernel(x_ref, w_ref, b_ref, y_ref, stats_ref):
    """
    x_ref:     (1, L_conv, K*C_in)  VMEM   (im2col'd input row)
    w_ref:     (K*C_in, C_out)      VMEM   (resident across the grid)
    b_ref:     (1, C_out)           VMEM
    y_ref:     (1, L_conv, C_out)   VMEM   (conv + bias output, f32)
    stats_ref: (1, 2, C_out)        VMEM   (row 0: sum, row 1: sum of squares)
    """
    y = jnp.dot(x_ref[0], w_ref[...], preferred_element_type=jnp.float32)
    y = y + b_ref[...]                         # bias, broadcast over L
    y_ref[0] = y.astype(y_ref.dtype)
    # Partial BN statistics for this batch row (reduced across the grid in XLA).
    stats_ref[0, 0:1, :] = jnp.sum(y, axis=0, keepdims=True)
    stats_ref[0, 1:2, :] = jnp.sum(y * y, axis=0, keepdims=True)


# ---------------------------------------------------------------------------
# Pass 2: BN affine + MaxPool1d(pool) + exact GELU, one block store per row.
# The pooled view is pre-transposed in the wrapper to (N, pool, L_pool, C_out),
# so only static leading-dim indexing is needed here (no strided ref reads).
# ---------------------------------------------------------------------------
def _bn_pool_gelu_kernel(y_ref, scale_ref, shift_ref, o_ref, *, pool: int):
    """
    y_ref:     (1, pool, L_pool, C_out)  VMEM
    scale_ref: (1, C_out)                VMEM   (gamma * rsqrt(var+eps))
    shift_ref: (1, C_out)                VMEM   (beta  - mean*scale)
    o_ref:     (1, L_pool, C_out)        VMEM
    """
    scale = scale_ref[...]                     # loaded once per grid step
    shift = shift_ref[...]
    # Applying the BN affine per pooling-phase slice and max-reducing over p is exactly
    # BN-then-MaxPool and costs the same total VPU work as one full affine.
    m = y_ref[0, 0] * scale + shift            # (L_pool, C_out), contiguous load
    for p in range(1, pool):
        m = jnp.maximum(m, y_ref[0, p] * scale + shift)
    # Dropout(p=0.0) is the identity -> nothing to compute.
    o_ref[0] = _gelu_exact(m).astype(o_ref.dtype)   # single block store per row


# ---------------------------------------------------------------------------
# VMEM budgeting helper (layout-padded block bytes, x2 for double buffering).
# ---------------------------------------------------------------------------
def _padded_block_bytes(shape, dtype):
    shape = tuple(int(d) for d in shape)
    lanes = -(-shape[-1] // 128) * 128
    rows = -(-shape[-2] // 8) * 8 if len(shape) >= 2 else 1
    lead = 1
    for d in shape[:-2]:
        lead *= d
    return lead * rows * lanes * jnp.dtype(dtype).itemsize


def _vmem_limit(blocks):
    total = sum(_padded_block_bytes(s, d) for s, d in blocks)
    # 2x for BlockSpec double-buffering + headroom for compiler-internal scratch,
    # clamped to stay inside v7x's 64 MiB physical VMEM.
    return int(min(64 * 1024 * 1024, max(16 * 1024 * 1024, 2 * total + (2 << 20))))


# ---------------------------------------------------------------------------
# Wrapper: PyTorch-layout (N, C_in, L) in, (N, C_out, L_pool) out.
# ---------------------------------------------------------------------------
def conv_layer_forward(x, w, b, gamma, beta, *, pool_size, eps=1e-5,
                       compute_dtype=jnp.float32):
    """scBasset ConvLayer forward.

    x: (N, C_in, L) float32 (NCL, like torch.nn.Conv1d input).
    compute_dtype: dtype of the MXU matmul operands.  Use jnp.bfloat16 on v5e/v6e for
    2x MXU rate and half the DMA bytes; accumulation and BN/pool/GELU stay float32.
    """
    n, c_in, l = x.shape
    c_out, _, k = w.shape
    pad = k // 2
    l_pad = l + 2 * pad
    l_conv = l_pad - k + 1
    p = int(pool_size) if pool_size is not None else 1   # None -> Identity pool
    l_pool = l_conv // p
    kc = k * c_in

    # ---- im2col in XLA: channels-last, K folded into the contraction dim ----
    x_pad = jnp.pad(x.astype(jnp.float32), ((0, 0), (0, 0), (pad, pad)))
    x_t = jnp.transpose(x_pad, (0, 2, 1))                            # (N, L_pad, C_in)
    x_col = jnp.concatenate([x_t[:, kk:kk + l_conv, :] for kk in range(k)],
                            axis=-1).astype(compute_dtype)           # (N, L_conv, K*C_in)
    w_col = jnp.transpose(w.astype(jnp.float32), (2, 1, 0)).reshape(kc, c_out)
    w_col = w_col.astype(compute_dtype)                              # (K*C_in, C_out)
    b_row = b.reshape(1, c_out).astype(jnp.float32)

    # ---- pass 1: conv + bias + per-row [sum, sumsq] partial stats ----
    blocks1 = [((1, l_conv, kc), compute_dtype), ((kc, c_out), compute_dtype),
               ((1, c_out), jnp.float32), ((1, l_conv, c_out), jnp.float32),
               ((1, 2, c_out), jnp.float32)]
    y, stats = pl.pallas_call(
        _conv_stats_kernel,
        grid=(n,),
        in_specs=[
            pl.BlockSpec((1, l_conv, kc), lambda i: (i, 0, 0)),
            pl.BlockSpec((kc, c_out), lambda i: (0, 0)),
            pl.BlockSpec((1, c_out), lambda i: (0, 0)),
        ],
        out_specs=[
            pl.BlockSpec((1, l_conv, c_out), lambda i: (i, 0, 0)),
            pl.BlockSpec((1, 2, c_out), lambda i: (i, 0, 0)),
        ],
        out_shape=[
            jax.ShapeDtypeStruct((n, l_conv, c_out), jnp.float32),
            jax.ShapeDtypeStruct((n, 2, c_out), jnp.float32),
        ],
        compiler_params=pltpu.CompilerParams(
            dimension_semantics=("parallel",),
            vmem_limit_bytes=_vmem_limit(blocks1)),
    )(x_col, w_col, b_row)

    # ---- tiny XLA reduction of partial stats -> per-channel BN scale / shift ----
    total = jnp.sum(stats, axis=0)                                   # (2, C_out), f32
    count = float(n * l_conv)
    mean = total[0] / count
    var = jnp.maximum(total[1] / count - mean * mean, 0.0)           # biased var (torch BN)
    inv = jax.lax.rsqrt(var + eps)
    g32 = gamma.astype(jnp.float32)
    scale = (g32 * inv).reshape(1, c_out)
    shift = (beta.astype(jnp.float32) - mean * g32 * inv).reshape(1, c_out)

    # ---- pooled view: (N, L_pool, pool, C_out) -> (N, pool, L_pool, C_out) ----
    # Pre-transposing in XLA (one cheap HBM pass) lets pass 2 use plain static
    # leading-dim indexing instead of strided ref reads (unsupported in discharge).
    y_t = jnp.transpose(
        y[:, :l_pool * p, :].reshape(n, l_pool, p, c_out), (0, 2, 1, 3))

    # ---- pass 2: BN affine + MaxPool + exact GELU ----
    blocks2 = [((1, p, l_pool, c_out), jnp.float32), ((1, c_out), jnp.float32),
               ((1, c_out), jnp.float32), ((1, l_pool, c_out), jnp.float32)]
    out_t = pl.pallas_call(
        functools.partial(_bn_pool_gelu_kernel, pool=p),
        grid=(n,),
        in_specs=[
            pl.BlockSpec((1, p, l_pool, c_out), lambda i: (i, 0, 0, 0)),
            pl.BlockSpec((1, c_out), lambda i: (0, 0)),
            pl.BlockSpec((1, c_out), lambda i: (0, 0)),
        ],
        out_specs=pl.BlockSpec((1, l_pool, c_out), lambda i: (i, 0, 0)),
        out_shape=jax.ShapeDtypeStruct((n, l_pool, c_out), jnp.float32),
        compiler_params=pltpu.CompilerParams(
            dimension_semantics=("parallel",),
            vmem_limit_bytes=_vmem_limit(blocks2)),
    )(y_t, scale, shift)

    return jnp.transpose(out_t, (0, 2, 1))                           # (N, C_out, L_pool)


# ---------------------------------------------------------------------------
# Plain-JAX reference mirroring the PyTorch ConvLayer (training-mode BatchNorm).
# ---------------------------------------------------------------------------
def reference_forward(x, w, b, gamma, beta, *, pool_size, eps=1e-5):
    k = w.shape[-1]
    pad = k // 2
    y = jax.lax.conv_general_dilated(
        x, w, window_strides=(1,), padding=[(pad, pad)],
        dimension_numbers=("NCH", "OIH", "NCH"))
    y = y + b[None, :, None]
    mean = jnp.mean(y, axis=(0, 2), keepdims=True)
    var = jnp.mean((y - mean) ** 2, axis=(0, 2), keepdims=True)
    y = (y - mean) * jax.lax.rsqrt(var + eps) * gamma[None, :, None] + beta[None, :, None]
    p = pool_size if pool_size is not None else 1
    lp = y.shape[-1] // p
    y = y[..., :lp * p].reshape(y.shape[0], y.shape[1], lp, p).max(axis=-1)
    return 0.5 * y * (1.0 + jax.lax.erf(y * 0.7071067811865476))


if __name__ == "__main__":
    # Small shapes consistent with ConvLayer(in_channels=4, out_channels=8,
    # kernel_size=5, pool_size=2) applied to x of shape (batch=2, 4, L=16).
    N, C_IN, L = 2, 4, 16
    C_OUT, K, POOL = 8, 5, 2

    key = jax.random.PRNGKey(0)
    kx, kw, kb, kg, kbe = jax.random.split(key, 5)

    x = jax.random.normal(kx, (N, C_IN, L), jnp.float32)
    # Deterministic parameter init (Conv1d-style uniform bound = 1/sqrt(C_in*K)).
    bound = 1.0 / float((C_IN * K) ** 0.5)
    w = jax.random.uniform(kw, (C_OUT, C_IN, K), jnp.float32, -bound, bound)
    b = jax.random.uniform(kb, (C_OUT,), jnp.float32, -bound, bound)
    gamma = 1.0 + 0.1 * jax.random.normal(kg, (C_OUT,), jnp.float32)
    beta = 0.1 * jax.random.normal(kbe, (C_OUT,), jnp.float32)

    ref = reference_forward(x, w, b, gamma, beta, pool_size=POOL)

    # f32 path: matches the PyTorch module (erf approximated to ~1.5e-7).
    out = jax.block_until_ready(conv_layer_forward(x, w, b, gamma, beta, pool_size=POOL))
    assert out.shape == (N, C_OUT, L // POOL), out.shape
    assert jnp.allclose(out, ref, atol=1e-4, rtol=1e-4), float(jnp.max(jnp.abs(out - ref)))

    # bf16-MXU-input path (v6e/v5e throughput option); f32 accumulation/BN keep it close.
    out_bf16 = jax.block_until_ready(
        conv_layer_forward(x, w, b, gamma, beta, pool_size=POOL,
                           compute_dtype=jnp.bfloat16))
    assert jnp.allclose(out_bf16, ref, atol=1e-1), float(jnp.max(jnp.abs(out_bf16 - ref)))

    # TODO(synk): the remaining scBasset pieces (DenseLayer bottleneck, final Linear,
    # softmax) are plain matmul/softmax layers; this kernel covers the ConvLayer block
    # (stem / tower / pre-bottleneck) that the review targeted.
    print("KERNEL_OK")
</pallas_src>

<mosaic_0001>
module attributes {stable_mosaic.version = 11 : i64} {
  func.func @_conv_stats_kernel(%arg0: i32, %arg1: memref<1x16x20xf32, #tpu.memory_space<vmem>>, %arg2: memref<20x8xf32, #tpu.memory_space<vmem>>, %arg3: memref<1x8xf32, #tpu.memory_space<vmem>>, %arg4: memref<1x16x8xf32, #tpu.memory_space<vmem>>, %arg5: memref<1x2x8xf32, #tpu.memory_space<vmem>>) attributes {dimension_semantics = [#tpu.dimension_semantics<parallel>], iteration_bounds = array<i64: 2>, scalar_prefetch = 0 : i64, scratch_operands = 0 : i64, tpu.core_type = #tpu.core_type<tc>, window_params = [{transform_indices = @transform_0, window_bounds = array<i64: 1, 16, 20>}, {pipeline_mode = #tpu.pipeline_mode<synchronous>, transform_indices = @transform_1, window_bounds = array<i64: 20, 8>}, {pipeline_mode = #tpu.pipeline_mode<synchronous>, transform_indices = @transform_2, window_bounds = array<i64: 1, 8>}, {transform_indices = @transform_3, window_bounds = array<i64: 1, 16, 8>}, {transform_indices = @transform_4, window_bounds = array<i64: 1, 2, 8>}]} {
    %c0 = arith.constant 0 : index
    %c0_0 = arith.constant 0 : index
    %c0_1 = arith.constant 0 : index
    %0 = vector.load %arg1[%c0, %c0_0, %c0_1] : memref<1x16x20xf32, #tpu.memory_space<vmem>>, vector<1x16x20xf32>
    %1 = vector.shape_cast %0 : vector<1x16x20xf32> to vector<16x20xf32>
    %c0_2 = arith.constant 0 : index
    %c0_3 = arith.constant 0 : index
    %2 = vector.load %arg2[%c0_2, %c0_3] : memref<20x8xf32, #tpu.memory_space<vmem>>, vector<20x8xf32>
    %cst = arith.constant dense<0.000000e+00> : vector<16x8xf32>
    %3 = tpu.matmul %1, %2, %cst {dimension_numbers = #tpu.dot_dimension_numbers<[1], [0], [0], [1], [0, 0, 1, 1], [], []>} : vector<16x20xf32>, vector<20x8xf32>, vector<16x8xf32> -> vector<16x8xf32>
    %c0_4 = arith.constant 0 : index
    %c0_5 = arith.constant 0 : index
    %4 = vector.load %arg3[%c0_4, %c0_5] : memref<1x8xf32, #tpu.memory_space<vmem>>, vector<1x8xf32>
    %5 = vector.broadcast %4 : vector<1x8xf32> to vector<16x8xf32>
    %6 = arith.addf %3, %5 : vector<16x8xf32>
    %c0_6 = arith.constant 0 : index
    %c0_7 = arith.constant 0 : index
    %c0_8 = arith.constant 0 : index
    %7 = vector.load %arg4[%c0_6, %c0_7, %c0_8] : memref<1x16x8xf32, #tpu.memory_space<vmem>>, vector<1x16x8xf32>
    %8 = vector.shape_cast %7 : vector<1x16x8xf32> to vector<16x8xf32>
    %9 = vector.shape_cast %6 : vector<16x8xf32> to vector<1x16x8xf32>
    tpu.vector_store %arg4[%c0_6, %c0_7, %c0_8], %9 {strides = array<i32>} : memref<1x16x8xf32, #tpu.memory_space<vmem>>, vector<1x16x8xf32>,
    %cst_9 = arith.constant dense<0.000000e+00> : vector<8xf32>
    %10 = vector.multi_reduction <add>, %6, %cst_9 [0] : vector<16x8xf32> to vector<8xf32>
    %11 = vector.shape_cast %10 : vector<8xf32> to vector<1x8xf32>
    %c0_10 = arith.constant 0 : index
    %c0_11 = arith.constant 0 : index
    %c0_12 = arith.constant 0 : index
    %12 = vector.load %arg5[%c0_10, %c0_11, %c0_12] : memref<1x2x8xf32, #tpu.memory_space<vmem>>, vector<1x1x8xf32>
    %13 = vector.shape_cast %12 : vector<1x1x8xf32> to vector<1x8xf32>
    %14 = vector.shape_cast %11 : vector<1x8xf32> to vector<1x1x8xf32>
    tpu.vector_store %arg5[%c0_10, %c0_11, %c0_12], %14 {strides = array<i32>} : memref<1x2x8xf32, #tpu.memory_space<vmem>>, vector<1x1x8xf32>,
    %15 = arith.mulf %6, %6 : vector<16x8xf32>
    %cst_13 = arith.constant dense<0.000000e+00> : vector<8xf32>
    %16 = vector.multi_reduction <add>, %15, %cst_13 [0] : vector<16x8xf32> to vector<8xf32>
    %17 = vector.shape_cast %16 : vector<8xf32> to vector<1x8xf32>
    %c0_14 = arith.constant 0 : index
    %c1 = arith.constant 1 : index
    %c0_15 = arith.constant 0 : index
    %18 = vector.load %arg5[%c0_14, %c1, %c0_15] : memref<1x2x8xf32, #tpu.memory_space<vmem>>, vector<1x1x8xf32>
    %19 = vector.shape_cast %18 : vector<1x1x8xf32> to vector<1x8xf32>
    %20 = vector.shape_cast %17 : vector<1x8xf32> to vector<1x1x8xf32>
    tpu.vector_store %arg5[%c0_14, %c1, %c0_15], %20 {strides = array<i32>} : memref<1x2x8xf32, #tpu.memory_space<vmem>>, vector<1x1x8xf32>,
    return
  }
  func.func @transform_0(%arg0: i32) -> (i32, i32, i32) {
    %c0_i32 = arith.constant 0 : i32
    %c0_i32_0 = arith.constant 0 : i32
    %c0_i32_1 = arith.constant 0 : i32
    return %arg0, %c0_i32, %c0_i32_0 : i32, i32, i32
  }
  func.func @transform_1(%arg0: i32) -> (i32, i32) {
    %c0_i32 = arith.constant 0 : i32
    %c0_i32_0 = arith.constant 0 : i32
    %c0_i32_1 = arith.constant 0 : i32
    return %c0_i32, %c0_i32_0 : i32, i32
  }
  func.func @transform_2(%arg0: i32) -> (i32, i32) {
    %c0_i32 = arith.constant 0 : i32
    %c0_i32_0 = arith.constant 0 : i32
    %c0_i32_1 = arith.constant 0 : i32
    return %c0_i32, %c0_i32_0 : i32, i32
  }
  func.func @transform_3(%arg0: i32) -> (i32, i32, i32) {
    %c0_i32 = arith.constant 0 : i32
    %c0_i32_0 = arith.constant 0 : i32
    %c0_i32_1 = arith.constant 0 : i32
    return %arg0, %c0_i32, %c0_i32_0 : i32, i32, i32
  }
  func.func @transform_4(%arg0: i32) -> (i32, i32, i32) {
    %c0_i32 = arith.constant 0 : i32
    %c0_i32_0 = arith.constant 0 : i32
    %c0_i32_1 = arith.constant 0 : i32
    return %arg0, %c0_i32, %c0_i32_0 : i32, i32, i32
  }
}

</mosaic_0001>

<bundles_post_ra>
// kernel: tpu_custom_call.1
= control target key start
LH: loop header
LB: loop body
LE: loop exit
PB: predicated region body
PF: predicated region fallthrough
CT: control target
= control target key end

     0   :  { %10 = vsyncpa [#allocation3], 0  ;;  %s720_s0 = inlined_call_operand.vmem [shape: f32[2,16,20], index: 0, kind: input, shape index: {}]   ;;  %s721_s1 = inlined_call_operand.vmem [shape: f32[20,8], index: 1, kind: input, shape index: {}]   ;;  %s722_s2 = inlined_call_operand.vmem [shape: f32[1,8], index: 2, kind: input, shape index: {}]   ;;  %s723_s3 = inlined_call_operand.vmem [shape: f32[2,16,8], index: 3, kind: output, shape index: {0}]   ;;  %s724_s4 = inlined_call_operand.hbm [shape: f32[2,2,8], index: 4, kind: output, shape index: {1}]  }
   0x1   :  { %12 = vsyncpa [#allocation3 + $0x1], 0  ;;  %s605_s15 = smov 0   ;;  %s607_s16 = smov 0  }
   0x2   :  { %s609_s17 = smov 0   ;;  %s611_s18 = smov 0  }
   0x3 LB: > { %s626_s19 = sadd.s32 4294967295, %s577_s18   ;;  %s439_s20 = sadd.s32 4294967294, %s577_s18   ;;  %s577_s18 = sphi %s611_s18, %s730_s18   ;;  %s573_s17 = sphi %s609_s17, %s729_s17   ;;  %s569_s16 = sphi %s607_s16, %s728_s16   ;;  %s565_s15 = sphi %s605_s15, %s727_s15  }
   0x4   : > { %s630_s21 = sadd.s32 1, %s577_s18   ;;  %s119_s22 = sadd.s32 1, %s573_s17 }
   0x5   : > { %s116_s23 = ssub.s32 %s577_s18, %s630_s21  ;;  %p129_p0 = scmp.ne.s32.totalorder %s573_s17, %s569_s16 }
   0x6   : > { %p117_p1 = scmp.eq.s32.totalorder %s116_s23, 0  ;;  %p130_p2 = scmp.eq.s32.totalorder %s626_s19, 1 }
   0x7   : > { %p135_p3 = scmp.ne.s32.totalorder %s569_s16, %s565_s15  ;;  %p136_p4 = scmp.eq.s32.totalorder %s439_s20, 1 }
   0x8   : > { %s641_s24 = scalar_select %p117_p1, %s573_s17, %s119_s22  }
   0x9   : > { %p643_p5 = por %p130_p2, %p129_p0  ;;  %p647_p6 = por %p136_p4, %p135_p3 }
   0xa   : > { %p442_p7 = scmp.ge.s32.totalorder %s577_s18, 1  ;;  %p168_p8 = scmp.lt.s32.totalorder %s577_s18, 3 }
   0xc   : > { %p169_p9 = pnand %p442_p7, %p168_p8 }
   0xd   : > { %v211_v0 = vld [vmem:[%s721_s1] sm:$0xff] (!%p169_p9)  ;;  %v212_v1 = vld [vmem:[%s721_s1 + $0x8] sm:$0xff] (!%p169_p9)  ;;  %p199_p10 = scmp.lt.s32.totalorder (!%p169_p9), %s626_s19, 1  ;;  %v213_v3 = vld [vmem:[%s721_s1 + $0x10] sm:$0xf] (!%p169_p9)  ;;  %vm228_vm0 = vcmask (!%p169_p9), 1043456  }
   0xe   : > { %172 = sbr.rel (%p169_p9) target bundleno = 273 (0x111), region = 32  ;;  %v472_v2 = vpack.c.bf16 (!%p169_p9), %v212_v1, %v211_v0  ;;  %vm221_vm1 = vcmask (!%p169_p9), 162816   ;;  %v448_v6 = vld [vmem:[%s722_s2] ss:$0 sm:$0xff] (!%p169_p9)  ;;  %vm307_vm2 = vcmask (!%p169_p9), 64512   ;;  %s196_s23 = sand.u32 (!%p169_p9), 1, %s569_s16  }
   0xf   : > { %s443_s27 = sshll.u32 (!%p169_p9), %s196_s23, 1  ;;  %vm319_vm3 = vcmask (!%p169_p9), 57344   ;;  %s453_s28 = sshll.u32 (!%p169_p9), %s626_s19, 5 }
  0x10   : > { %473 = vmatprep.subr.bf16.mxu0 (!%p169_p9), %v472_v2  ;;  %s198_s29 = scalar_lea.vmem (!%p169_p9), [#allocation2], %s443_s27 }
  0x11   : > { %475 = vmatpush3.bf16.msra.mxu0 (!%p169_p9), %v472_v2  ;;  %s355_s30 = sshll.u32 (!%p169_p9), %s198_s29, 4  ;;  %s680_s30 = int_to_ptr.vmem [resolvable:$true] %s355_s30 }
  0x12   : > { %467 = vmatprep.subr.msk.mxu0 (!%p169_p9), %vm228_vm0, %v213_v3  ;;  %s515_s9 = scalar_lea.vmem (!%p169_p9), %s680_s30, 32 }
  0x13   : > { %p516_p11 = scmp.ne.s32.totalorder (!%p169_p9), %s680_s30, %s515_s9 }
  0x15   : > { %s200_s7 = scalar_select %p199_p10, %s626_s19, 1  ;;  %468 = vmatpush3.msk.msra.mxu0 %vm228_vm0, %v213_v3 }
  0x16   : > { %p517_p12 = pnand %p516_p11, %p643_p5  ;;  %s579_s19 = smov [#allocation2]  }
  0x17   : > { %s456_s8 = sshll.u32 %s200_s7, 4  ;;  %s678_s7 = scalar_lea.hbm %s724_s4, %s453_s28 }
  0x18   : > { %s203_s11 = scalar_lea.vmem %s720_s0, %s456_s8  ;;  %s208_s22 = scalar_lea.vmem %s723_s3, %s456_s8 }
  0x19   : > { %v209_v4 = vld [vmem:[%s203_s11] sm:$0xff]  ;;  %v210_v5 = vld [vmem:[%s203_s11 + $0x8] sm:$0xff]  ;;  %s339_s8 = scalar_lea.sflag [#allocation3], %s196_s23  ;;  %p518_p13 = pneg %p517_p12 }
  0x1a   : > { %469 = vmatprep.mubr.msk.f32.mxu0 %vm221_vm1, %v209_v4  ;;  %s519_s10 = sshll.u32 %s579_s19, 4  ;;  %s520_s10 = int_to_ptr.vmem [resolvable:$false] %s519_s10 }
  0x1b   : > { %470 = vmatmul.mubr.msk.f32.vlgmr.msra.gmra.mrb[0].mxu0 %vm221_vm1, %v210_v5  ;;  %s521_s11 = scalar_lea.vmem %s520_s10, 64  ;;  %p522_p0 = scmp.lt.s32.totalorder %s680_s30, %s520_s10 }
  0x1c   : > { %p523_p1 = scmp.lt.s32.totalorder %s521_s11, %s515_s9 }
  0x1e   : > { %p524_p2 = por %p523_p1, %p522_p0 }
  0x20   : > { %p525_p3 = pnand %p524_p2, %p518_p13 }
  0xee   : > { %v471_v7 = vpop.f32.mrb[0].mxu0 }
  0xef   : > { %v304_v8 = vadd.f32 %v471_v7, %v448_v6  ;;  %v298_v9 = vpop.f32.mrb[1].mxu0 }
  0xf0   : > { %v299_v10 = vadd.f32 %v448_v6, %v298_v9 }
  0xf1   : > { %309 = vst.msk [vmem:[%s208_s22 + $0x8] sm:$0xff] %vm307_vm2, %v304_v8  ;;  %v311_v11 = vsel %vm307_vm2, %v304_v8, 0.0  ;;  %v322_v12 = vmul.f32 %v304_v8, %v304_v8 }
  0xf2   : > { %308 = vst.msk [vmem:[%s208_s22] sm:$0xff] %vm307_vm2, %v299_v10  ;;  %v310_v13 = vsel %vm307_vm2, %v299_v10, 0.0  ;;  %v321_v14 = vmul.f32 %v299_v10, %v299_v10 }
  0xf3   : > { %v324_v15 = vsel %vm307_vm2, %v322_v12, 0.0  ;;  %v312_v16 = vadd.f32 %v311_v11, %v310_v13 }
  0xf4   : > { %v323_v17 = vsel %vm307_vm2, %v321_v14, 0.0 }
  0xf5   : > { %v313_v18 = vrot.slane %v312_v16, 4  ;;  %v325_v19 = vadd.f32 %v324_v15, %v323_v17 }
  0xf7   : > { %v314_v20 = vadd.f32 %v313_v18, %v312_v16  ;;  %v326_v21 = vrot.slane %v325_v19, 4 }
  0xf9   : > { %v315_v22 = vrot.slane %v314_v20, 2  ;;  %v327_v23 = vadd.f32 %v326_v21, %v325_v19 }
  0xfb   : > { %v316_v24 = vadd.f32 %v315_v22, %v314_v20  ;;  %v328_v25 = vrot.slane %v327_v23, 2 }
  0xfd   : > { %v317_v26 = vrot.slane %v316_v24, 1  ;;  %v329_v27 = vadd.f32 %v328_v25, %v327_v23 }
  0xff   : > { %v318_v28 = vadd.f32 %v317_v26, %v316_v24  ;;  %v330_v29 = vrot.slane %v329_v27, 1 }
 0x101   : > { %320 = vst.msk [vmem:[%s198_s29] sm:$0x1] %vm319_vm3, %v318_v28  ;;  %v331_v30 = vadd.f32 %v330_v29, %v329_v27 }
 0x103   : > { %332 = vst.msk [vmem:[%s198_s29 + $0x1] sm:$0x1] %vm319_vm3, %v331_v30 }
 0x104   : > { %528 = shalt.err (!%p525_p3)
}
 0x105   : > { %s529_s12 = scalar_lea.hbm %s678_s7, 32  ;;  %s533_s20 = scalar_lea.hbm %s724_s4, 64 }
 0x106   : > { %p530_p4 = scmp.ne.s32.totalorder %s678_s7, %s529_s12  ;;  %p534_p9 = scmp.lt.u32.totalorder %s678_s7, %s724_s4 }
 0x107   : > { %p535_p10 = scmp.lt.u32.totalorder %s533_s20, %s529_s12  ;;  %p537_p12 = scmp.lt.u32.totalorder %s529_s12, %s678_s7 }
 0x108   : > { %p531_p7 = pnand %p530_p4, %p643_p5 }
 0x109   : > { %p536_p11 = por %p535_p10, %p534_p9 }
 0x10a   : > { %p532_p8 = pneg %p531_p7 }
 0x10b   : > { %p538_p13 = por %p537_p12, %p536_p11 }
 0x10d   : > { %p539_p0 = pnand %p538_p13, %p532_p8 }
 0x10f   : > { %542 = shalt.err (!%p539_p0)
}
 0x110   : > { %476 = dma.vmem_to_hbm [thread:$0]  (%p643_p5), %s680_s30, 32, %s678_s7, %s339_s8  }
 0x111 PF: > { %p482_p1 = scmp.ge.s32.totalorder %s577_s18, 2  ;;  %s375_s27 = sand.u32 1, %s565_s15  }
 0x112   : > { %s376_s28 = scalar_lea.sflag [#allocation3], %s375_s27 }
 0x113   : > { %p479_p2 = pnand %p482_p1, %p647_p6 }
 0x115   : > { %560 = dma.done.wait (!%p479_p2), %s376_s28, 32  }
 0x116   : > { %562 = vsyncadd (!%p479_p2), %s376_s28, 4294967264  ;;  %p15_p3 = scmp.ge.s32.totalorder %s630_s21, 4   ;;  %s727_s15 = smov %s569_s16 }
 0x117   : > { %s728_s16 = smov %s573_s17  ;;  %s729_s17 = smov %s641_s24 }
 0x118   : > { %s730_s18 = smov %s630_s21  ;;  %17 = sbr.rel (!%p15_p3) target bundleno = 3 (0x3), region = 79 }
 0x11f   :  { %381 = vsyncpa [#allocation3], 1 }
 0x120   :  { %383 = vsyncpa [#allocation3 + $0x1], 1 }

</bundles_post_ra>
